<compile_context>
chip_gen: v7x
topology: tpu7x:2x2x1
jax: 0.10.0
libtpu: 0.0.40
codegen_flags: <defaults>
</compile_context>

<pallas_src>
import functools

import jax
import jax.numpy as jnp
from jax.experimental import pallas as pl
from jax.experimental.pallas import tpu as pltpu


# ---------------------------------------------------------------------------
# Kernel
# ---------------------------------------------------------------------------
def policy_net_kernel(x_ref, w1_ref, b1_ref, w2_ref, b2_ref, w3_ref, b3_ref, o_ref):
    """Fused MLP + softmax on one (TB, state_dim) batch tile.

    Weights arrive pre-cast to bf16 (lane-padded); biases are f32 (1, out).
    Matmuls accumulate in f32 on the MXU; elementwise math stays f32.
    """
    x = x_ref[...].astype(jnp.bfloat16)

    # Layer 1: Linear + ReLU
    h1 = jnp.dot(x, w1_ref[...], preferred_element_type=jnp.float32) + b1_ref[...]
    h1 = jnp.maximum(h1, 0.0)

    # Layer 2: Linear + ReLU
    h2 = jnp.dot(h1.astype(jnp.bfloat16), w2_ref[...],
                 preferred_element_type=jnp.float32) + b2_ref[...]
    h2 = jnp.maximum(h2, 0.0)

    # Layer 3: Linear (logits). Padded action columns carry bias = -1e30 so
    # they vanish under softmax.
    logits = jnp.dot(h2.astype(jnp.bfloat16), w3_ref[...],
                     preferred_element_type=jnp.float32) + b3_ref[...]

    # Numerically-stable softmax over the (lane-padded) action dim.
    m = jnp.max(logits, axis=-1, keepdims=True)
    e = jnp.exp(logits - m)
    denom = jnp.sum(e, axis=-1, keepdims=True)
    o_ref[...] = e * pl.reciprocal(denom, approx=True)


# ---------------------------------------------------------------------------
# Wrapper
# ---------------------------------------------------------------------------
def _round_up(x, m):
    return pl.cdiv(x, m) * m


@functools.partial(jax.jit, static_argnames=("tb",))
def policy_network_forward(state, params, *, tb=256):
    """state: (B, state_dim) f32.  params: dict of w1,b1,w2,b2,w3,b3.

    Weights are (in_features, out_features); biases are (1, out_features).
    Returns (B, action_dim) f32 action probabilities.
    """
    w1, b1, w2, b2, w3, b3 = (params[k] for k in ("w1", "b1", "w2", "b2", "w3", "b3"))

    B, state_dim = state.shape
    hidden = w1.shape[1]
    action_dim = w3.shape[1]

    # Lane-dense padding of feature dims (multiples of 128).
    H = _round_up(hidden, 128)
    N = _round_up(action_dim, 128)
    ph, pn = H - hidden, N - action_dim

    # Padded hidden units: zero weight + zero bias -> ReLU(0) = 0, contribute
    # nothing downstream.  Padded action columns: zero weight + -1e30 bias ->
    # exp() underflows to 0, so softmax over real actions is exact.
    w1p = jnp.pad(w1, ((0, 0), (0, ph))).astype(jnp.bfloat16)
    b1p = jnp.pad(b1, ((0, 0), (0, ph))).astype(jnp.float32)
    w2p = jnp.pad(w2, ((0, ph), (0, ph))).astype(jnp.bfloat16)
    b2p = jnp.pad(b2, ((0, 0), (0, ph))).astype(jnp.float32)
    w3p = jnp.pad(w3, ((0, ph), (0, pn))).astype(jnp.bfloat16)
    b3p = jnp.pad(b3, ((0, 0), (0, pn)), constant_values=-1e30).astype(jnp.float32)

    # Batch tiling: TB rows per grid step (sublane-aligned), pad B up to a
    # multiple of TB.  Small enough to fit comfortably in v7x's 64 MiB VMEM.
    TB = int(min(tb, _round_up(B, 8)))
    B_pad = int(_round_up(B, TB))
    x = state.astype(jnp.float32)
    if B_pad != B:
        x = jnp.pad(x, ((0, B_pad - B), (0, 0)))

    grid = (B_pad // TB,)

    out = pl.pallas_call(
        policy_net_kernel,
        out_shape=jax.ShapeDtypeStruct((B_pad, N), jnp.float32),
        grid=grid,
        in_specs=[
            pl.BlockSpec((TB, state_dim), lambda i: (i, 0)),   # state tile
            pl.BlockSpec((state_dim, H), lambda i: (0, 0)),    # w1 (resident)
            pl.BlockSpec((1, H), lambda i: (0, 0)),            # b1
            pl.BlockSpec((H, H), lambda i: (0, 0)),            # w2
            pl.BlockSpec((1, H), lambda i: (0, 0)),            # b2
            pl.BlockSpec((H, N), lambda i: (0, 0)),            # w3
            pl.BlockSpec((1, N), lambda i: (0, 0)),            # b3
        ],
        out_specs=pl.BlockSpec((TB, N), lambda i: (i, 0)),
        compiler_params=pltpu.CompilerParams(
            dimension_semantics=("parallel",),                 # megacore on v7x
        ),
    )(x, w1p, b1p, w2p, b2p, w3p, b3p)

    return out[:B, :action_dim]


# ---------------------------------------------------------------------------
# Params / reference
# ---------------------------------------------------------------------------
def init_params(key, state_dim, hidden_dim, action_dim):
    """Deterministic init mimicking PyTorch's uniform(-1/sqrt(fan_in), ...)."""
    ks = jax.random.split(key, 6)

    def linear(kw, kb, fan_in, fan_out):
        bound = 1.0 / jnp.sqrt(jnp.float32(fan_in))
        w = jax.random.uniform(kw, (fan_in, fan_out), jnp.float32, -bound, bound)
        b = jax.random.uniform(kb, (1, fan_out), jnp.float32, -bound, bound)
        return w, b

    w1, b1 = linear(ks[0], ks[1], state_dim, hidden_dim)
    w2, b2 = linear(ks[2], ks[3], hidden_dim, hidden_dim)
    w3, b3 = linear(ks[4], ks[5], hidden_dim, action_dim)
    return dict(w1=w1, b1=b1, w2=w2, b2=b2, w3=w3, b3=b3)


def reference_forward(state, params):
    """Pure-JAX f32 reference for correctness check."""
    h = jnp.maximum(state @ params["w1"] + params["b1"], 0.0)
    h = jnp.maximum(h @ params["w2"] + params["b2"], 0.0)
    logits = h @ params["w3"] + params["b3"]
    return jax.nn.softmax(logits, axis=-1)


if __name__ == "__main__":
    key = jax.random.PRNGKey(0)
    k_param, k_state = jax.random.split(key)

    # hidden_dim=128 matches the PyTorch module default; batch 512 exercises
    # the batch grid (2 tiles of 256).
    B, state_dim, hidden_dim, action_dim = 512, 16, 128, 8

    params = init_params(k_param, state_dim, hidden_dim, action_dim)
    state = jax.random.normal(k_state, (B, state_dim), dtype=jnp.float32)

    out = policy_network_forward(state, params, tb=256)
    out = jax.block_until_ready(out)

    ref = reference_forward(state, params)
    assert out.shape == (B, action_dim)
    # Probabilities: rows sum to ~1 (approx reciprocal -> small slack).
    assert jnp.allclose(jnp.sum(out, axis=-1), 1.0, atol=5e-3)
    # bf16 MXU operands -> looser tolerance vs. f32 reference.
    assert jnp.allclose(out, ref, atol=2e-2, rtol=2e-2)

    print("KERNEL_OK")
</pallas_src>

<mosaic_0001>
module attributes {stable_mosaic.version = 11 : i64} {
  func.func @policy_net_kernel(%arg0: i32, %arg1: memref<256x16xf32, #tpu.memory_space<vmem>>, %arg2: memref<16x128xbf16, #tpu.memory_space<vmem>>, %arg3: memref<1x128xf32, #tpu.memory_space<vmem>>, %arg4: memref<128x128xbf16, #tpu.memory_space<vmem>>, %arg5: memref<1x128xf32, #tpu.memory_space<vmem>>, %arg6: memref<128x128xbf16, #tpu.memory_space<vmem>>, %arg7: memref<1x128xf32, #tpu.memory_space<vmem>>, %arg8: memref<256x128xf32, #tpu.memory_space<vmem>>) attributes {dimension_semantics = [#tpu.dimension_semantics<parallel>], iteration_bounds = array<i64: 2>, scalar_prefetch = 0 : i64, scratch_operands = 0 : i64, tpu.core_type = #tpu.core_type<tc>, window_params = [{transform_indices = @transform_0, window_bounds = array<i64: 256, 16>}, {pipeline_mode = #tpu.pipeline_mode<synchronous>, transform_indices = @transform_1, window_bounds = array<i64: 16, 128>}, {pipeline_mode = #tpu.pipeline_mode<synchronous>, transform_indices = @transform_2, window_bounds = array<i64: 1, 128>}, {pipeline_mode = #tpu.pipeline_mode<synchronous>, transform_indices = @transform_3, window_bounds = array<i64: 128, 128>}, {pipeline_mode = #tpu.pipeline_mode<synchronous>, transform_indices = @transform_4, window_bounds = array<i64: 1, 128>}, {pipeline_mode = #tpu.pipeline_mode<synchronous>, transform_indices = @transform_5, window_bounds = array<i64: 128, 128>}, {pipeline_mode = #tpu.pipeline_mode<synchronous>, transform_indices = @transform_6, window_bounds = array<i64: 1, 128>}, {transform_indices = @transform_7, window_bounds = array<i64: 256, 128>}]} {
    %c0 = arith.constant 0 : index
    %c0_0 = arith.constant 0 : index
    %0 = vector.load %arg1[%c0, %c0_0] : memref<256x16xf32, #tpu.memory_space<vmem>>, vector<256x16xf32>
    %1 = arith.truncf %0 : vector<256x16xf32> to vector<256x16xbf16>
    %c0_1 = arith.constant 0 : index
    %c0_2 = arith.constant 0 : index
    %2 = vector.load %arg2[%c0_1, %c0_2] : memref<16x128xbf16, #tpu.memory_space<vmem>>, vector<16x128xbf16>
    %cst = arith.constant dense<0.000000e+00> : vector<256x128xf32>
    %3 = tpu.matmul %1, %2, %cst {dimension_numbers = #tpu.dot_dimension_numbers<[1], [0], [0], [1], [0, 0, 1, 1], [], []>} : vector<256x16xbf16>, vector<16x128xbf16>, vector<256x128xf32> -> vector<256x128xf32>
    %c0_3 = arith.constant 0 : index
    %c0_4 = arith.constant 0 : index
    %4 = vector.load %arg3[%c0_3, %c0_4] : memref<1x128xf32, #tpu.memory_space<vmem>>, vector<1x128xf32>
    %5 = vector.broadcast %4 : vector<1x128xf32> to vector<256x128xf32>
    %6 = arith.addf %3, %5 : vector<256x128xf32>
    %cst_5 = arith.constant 0.000000e+00 : f32
    %7 = vector.broadcast %cst_5 : f32 to vector<256x128xf32>
    %8 = arith.maximumf %6, %7 : vector<256x128xf32>
    %9 = arith.truncf %8 : vector<256x128xf32> to vector<256x128xbf16>
    %c0_6 = arith.constant 0 : index
    %c0_7 = arith.constant 0 : index
    %10 = vector.load %arg4[%c0_6, %c0_7] : memref<128x128xbf16, #tpu.memory_space<vmem>>, vector<128x128xbf16>
    %cst_8 = arith.constant dense<0.000000e+00> : vector<256x128xf32>
    %11 = tpu.matmul %9, %10, %cst_8 {dimension_numbers = #tpu.dot_dimension_numbers<[1], [0], [0], [1], [0, 0, 1, 1], [], []>} : vector<256x128xbf16>, vector<128x128xbf16>, vector<256x128xf32> -> vector<256x128xf32>
    %c0_9 = arith.constant 0 : index
    %c0_10 = arith.constant 0 : index
    %12 = vector.load %arg5[%c0_9, %c0_10] : memref<1x128xf32, #tpu.memory_space<vmem>>, vector<1x128xf32>
    %13 = vector.broadcast %12 : vector<1x128xf32> to vector<256x128xf32>
    %14 = arith.addf %11, %13 : vector<256x128xf32>
    %cst_11 = arith.constant 0.000000e+00 : f32
    %15 = vector.broadcast %cst_11 : f32 to vector<256x128xf32>
    %16 = arith.maximumf %14, %15 : vector<256x128xf32>
    %17 = arith.truncf %16 : vector<256x128xf32> to vector<256x128xbf16>
    %c0_12 = arith.constant 0 : index
    %c0_13 = arith.constant 0 : index
    %18 = vector.load %arg6[%c0_12, %c0_13] : memref<128x128xbf16, #tpu.memory_space<vmem>>, vector<128x128xbf16>
    %cst_14 = arith.constant dense<0.000000e+00> : vector<256x128xf32>
    %19 = tpu.matmul %17, %18, %cst_14 {dimension_numbers = #tpu.dot_dimension_numbers<[1], [0], [0], [1], [0, 0, 1, 1], [], []>} : vector<256x128xbf16>, vector<128x128xbf16>, vector<256x128xf32> -> vector<256x128xf32>
    %c0_15 = arith.constant 0 : index
    %c0_16 = arith.constant 0 : index
    %20 = vector.load %arg7[%c0_15, %c0_16] : memref<1x128xf32, #tpu.memory_space<vmem>>, vector<1x128xf32>
    %21 = vector.broadcast %20 : vector<1x128xf32> to vector<256x128xf32>
    %22 = arith.addf %19, %21 : vector<256x128xf32>
    %cst_17 = arith.constant dense<0xFF800000> : vector<256xf32>
    %23 = vector.multi_reduction <maximumf>, %22, %cst_17 [1] : vector<256x128xf32> to vector<256xf32>
    %24 = vector.shape_cast %23 : vector<256xf32> to vector<256x1xf32>
    %25 = vector.broadcast %24 : vector<256x1xf32> to vector<256x128xf32>
    %26 = arith.subf %22, %25 : vector<256x128xf32>
    %27 = math.exp %26 : vector<256x128xf32>
    %cst_18 = arith.constant dense<0.000000e+00> : vector<256xf32>
    %28 = vector.multi_reduction <add>, %27, %cst_18 [1] : vector<256x128xf32> to vector<256xf32>
    %29 = vector.shape_cast %28 : vector<256xf32> to vector<256x1xf32>
    %30 = tpu.reciprocal %29 {approx = true} : vector<256x1xf32> -> vector<256x1xf32>
    %31 = vector.broadcast %30 : vector<256x1xf32> to vector<256x128xf32>
    %32 = arith.mulf %27, %31 : vector<256x128xf32>
    %c0_19 = arith.constant 0 : index
    %c0_20 = arith.constant 0 : index
    %33 = vector.load %arg8[%c0_19, %c0_20] : memref<256x128xf32, #tpu.memory_space<vmem>>, vector<256x128xf32>
    tpu.vector_store %arg8[%c0_19, %c0_20], %32 {strides = array<i32>} : memref<256x128xf32, #tpu.memory_space<vmem>>, vector<256x128xf32>,
    return
  }
  func.func @transform_0(%arg0: i32) -> (i32, i32) {
    %c0_i32 = arith.constant 0 : i32
    %c0_i32_0 = arith.constant 0 : i32
    return %arg0, %c0_i32 : i32, i32
  }
  func.func @transform_1(%arg0: i32) -> (i32, i32) {
    %c0_i32 = arith.constant 0 : i32
    %c0_i32_0 = arith.constant 0 : i32
    %c0_i32_1 = arith.constant 0 : i32
    return %c0_i32, %c0_i32_0 : i32, i32
  }
  func.func @transform_2(%arg0: i32) -> (i32, i32) {
    %c0_i32 = arith.constant 0 : i32
    %c0_i32_0 = arith.constant 0 : i32
    %c0_i32_1 = arith.constant 0 : i32
    return %c0_i32, %c0_i32_0 : i32, i32
  }
  func.func @transform_3(%arg0: i32) -> (i32, i32) {
    %c0_i32 = arith.constant 0 : i32
    %c0_i32_0 = arith.constant 0 : i32
    %c0_i32_1 = arith.constant 0 : i32
    return %c0_i32, %c0_i32_0 : i32, i32
  }
  func.func @transform_4(%arg0: i32) -> (i32, i32) {
    %c0_i32 = arith.constant 0 : i32
    %c0_i32_0 = arith.constant 0 : i32
    %c0_i32_1 = arith.constant 0 : i32
    return %c0_i32, %c0_i32_0 : i32, i32
  }
  func.func @transform_5(%arg0: i32) -> (i32, i32) {
    %c0_i32 = arith.constant 0 : i32
    %c0_i32_0 = arith.constant 0 : i32
    %c0_i32_1 = arith.constant 0 : i32
    return %c0_i32, %c0_i32_0 : i32, i32
  }
  func.func @transform_6(%arg0: i32) -> (i32, i32) {
    %c0_i32 = arith.constant 0 : i32
    %c0_i32_0 = arith.constant 0 : i32
    %c0_i32_1 = arith.constant 0 : i32
    return %c0_i32, %c0_i32_0 : i32, i32
  }
  func.func @transform_7(%arg0: i32) -> (i32, i32) {
    %c0_i32 = arith.constant 0 : i32
    %c0_i32_0 = arith.constant 0 : i32
    return %arg0, %c0_i32 : i32, i32
  }
}

</mosaic_0001>

<bundles_post_ra>
// kernel: policy_network_forward.1
= control target key start
LH: loop header
LB: loop body
LE: loop exit
PB: predicated region body
PF: predicated region fallthrough
CT: control target
= control target key end

     0   :  { %s1937_s24 = smov 0   ;;  %s2469_s0 = inlined_call_operand.vmem [shape: f32[512,16], index: 0, kind: input, shape index: {}]   ;;  %s2470_s1 = inlined_call_operand.vmem [shape: bf16[16,128], index: 1, kind: input, shape index: {}]   ;;  %s2471_s2 = inlined_call_operand.vmem [shape: f32[1,128], index: 2, kind: input, shape index: {}]   ;;  %s2472_s3 = inlined_call_operand.vmem [shape: bf16[128,128], index: 3, kind: input, shape index: {}]   ;;  %s2473_s4 = inlined_call_operand.vmem [shape: f32[1,128], index: 4, kind: input, shape index: {}]   ;;  %s2474_s5 = inlined_call_operand.vmem [shape: bf16[128,128], index: 5, kind: input, shape index: {}]   ;;  %s2475_s6 = inlined_call_operand.vmem [shape: f32[1,128], index: 6, kind: input, shape index: {}]   ;;  %s2476_s7 = inlined_call_operand.vmem [shape: f32[512,128], index: 7, kind: output, shape index: {}]  }
   0x1 LB: > { %s1492_s25 = sadd.s32 4294967295, %s1895_s24   ;;  %p1496_p0 = scmp.ge.s32.totalorder %s1895_s24, 1  ;;  %s1895_s24 = sphi %s1937_s24, %s17_s24  }
   0x2   : > { %p238_p1 = scmp.lt.s32.totalorder %s1895_s24, 3 }
   0x4   : > { %p239_p2 = pnand %p1496_p0, %p238_p1 }
   0x5   : > { %v1744_v0 = vld [vmem:[%s2470_s1] sm:$0xff] (!%p239_p2)   ;;  %s1497_s28 = sshll.u32 (!%p239_p2), %s1492_s25, 5  ;;  %vm346_vm0 = vcmask (!%p239_p2), 130048   ;;  %v1746_v23 = vld [vmem:[%s2472_s3 + $0x8] sm:$0xff] (!%p239_p2)   ;;  %v1747_v28 = vld [vmem:[%s2472_s3 + $0x10] sm:$0xff] (!%p239_p2)  }
   0x6   : > { %242 = sbr.rel (%p239_p2) target bundleno = 1055 (0x41f), region = 48  ;;  %p271_p3 = scmp.lt.s32.totalorder (!%p239_p2), %s1497_s28, 63  ;;  %1604 = vmatprep.subr.bf16.mxu0 (!%p239_p2), %v1744_v0  ;;  %1734 = vmatprep.subr.bf16.mxu1 (!%p239_p2), %v1744_v0  ;;  %v1745_v1 = vld [vmem:[%s2472_s3] sm:$0xff] (!%p239_p2)   ;;  %v1748_v37 = vld [vmem:[%s2472_s3 + $0x18] sm:$0xff] (!%p239_p2)   ;;  %v1750_v50 = vld [vmem:[%s2472_s3 + $0x28] sm:$0xff] (!%p239_p2)  }
   0x7   : > { %1605 = vmatpush3.bf16.msra.mxu0 (!%p239_p2), %v1744_v0  ;;  %1735 = vmatpush3.bf16.msra.mxu1 (!%p239_p2), %v1744_v0  ;;  %v1749_v45 = vld [vmem:[%s2472_s3 + $0x20] sm:$0xff] (!%p239_p2)   ;;  %v1751_v55 = vld [vmem:[%s2472_s3 + $0x30] sm:$0xff] (!%p239_p2)   ;;  %v1752_v56 = vld [vmem:[%s2472_s3 + $0x38] sm:$0xff] (!%p239_p2)  }
   0x8   : > { %1638 = vmatprep.subr.bf16.mxu1 (!%p239_p2), %v1745_v1  ;;  %v1753_v57 = vld [vmem:[%s2474_s5] sm:$0xff] (!%p239_p2)   ;;  %v1754_v58 = vld [vmem:[%s2474_s5 + $0x8] sm:$0xff] (!%p239_p2)   ;;  %v1755_v59 = vld [vmem:[%s2474_s5 + $0x10] sm:$0xff] (!%p239_p2)  }
   0x9   : > { %1686 = vmatprep.subr.bf16.mxu0 (!%p239_p2), %v1753_v57  ;;  %v1756_v60 = vld [vmem:[%s2474_s5 + $0x18] sm:$0xff] (!%p239_p2)   ;;  %v1757_v61 = vld [vmem:[%s2474_s5 + $0x20] sm:$0xff] (!%p239_p2)   ;;  %v1758_v62 = vld [vmem:[%s2474_s5 + $0x28] sm:$0xff] (!%p239_p2)  }
   0xa   : > { %v2051_v63 = vld [vmem:[%s2471_s2] ss:$0 sm:$0xff] (!%p239_p2) }
   0xd   : > { %s2478_s28 = smov (!%p271_p3, %s1497_s28), 63 }
   0xe   : > { %s1498_s8 = sshll.u32 %s2478_s28, 3 }
   0xf   : > { %s1959_s11 = scalar_lea.vmem %s2469_s0, %s1498_s8  ;;  %s2400_s10 = scalar_lea.vmem %s2476_s7, %s1498_s8 }
  0x10   : > { %v283_v2 = vld [vmem:[%s1959_s11] sm:$0xff]  ;;  %v284_v3 = vld [vmem:[%s1959_s11 + $0x8] sm:$0xff]  ;;  %v285_v4 = vld [vmem:[%s1959_s11 + $0x10] sm:$0xff] }
  0x11   : > { %v315_v5 = vpack.c.bf16 %v284_v3, %v283_v2  ;;  %v286_v6 = vld [vmem:[%s1959_s11 + $0x18] sm:$0xff]  ;;  %v287_v7 = vld [vmem:[%s1959_s11 + $0x20] sm:$0xff]  ;;  %v288_v8 = vld [vmem:[%s1959_s11 + $0x28] sm:$0xff] }
  0x12   : > { %v316_v9 = vpack.c.bf16 %v286_v6, %v285_v4  ;;  %v317_v10 = vpack.c.bf16 %v288_v8, %v287_v7  ;;  %v289_v11 = vld [vmem:[%s1959_s11 + $0x30] sm:$0xff]  ;;  %v290_v12 = vld [vmem:[%s1959_s11 + $0x38] sm:$0xff]  ;;  %v291_v13 = vld [vmem:[%s1959_s11 + $0x40] sm:$0xff] }
  0x13   : > { %1606 = vmatprep.mubr.msk.bf16.mxu0 %vm346_vm0, %v315_v5  ;;  %v292_v14 = vld [vmem:[%s1959_s11 + $0x48] sm:$0xff]  ;;  %v299_v15 = vld [vmem:[%s1959_s11 + $0x80] sm:$0xff]  ;;  %v301_v18 = vld [vmem:[%s1959_s11 + $0x90] sm:$0xff]  ;;  %v318_v24 = vpack.c.bf16 %v290_v12, %v289_v11 }
  0x14   : > { %1607 = vmatmul.mubr.msk.bf16.vlgmr.msra.gmra.mrb[0].mxu0 %vm346_vm0, %v316_v9  ;;  %v300_v16 = vld [vmem:[%s1959_s11 + $0x88] sm:$0xff]  ;;  %v302_v19 = vld [vmem:[%s1959_s11 + $0x98] sm:$0xff]  ;;  %v303_v20 = vld [vmem:[%s1959_s11 + $0xa0] sm:$0xff]  ;;  %v319_v26 = vpack.c.bf16 %v292_v14, %v291_v13 }
  0x15   : > { %1610 = vmatprep.mubr.msk.bf16.mxu0 %vm346_vm0, %v317_v10  ;;  %v323_v17 = vpack.c.bf16 %v300_v16, %v299_v15  ;;  %v324_v21 = vpack.c.bf16 %v302_v19, %v301_v18  ;;  %v304_v22 = vld [vmem:[%s1959_s11 + $0xa8] sm:$0xff]  ;;  %v305_v27 = vld [vmem:[%s1959_s11 + $0xb0] sm:$0xff]  ;;  %v306_v29 = vld [vmem:[%s1959_s11 + $0xb8] sm:$0xff]  ;;  %1687 = vmatpush3.bf16.msra.mxu0 %v1753_v57 }
  0x16   : > { %v325_v25 = vpack.c.bf16 %v304_v22, %v303_v20  ;;  %v307_v30 = vld [vmem:[%s1959_s11 + $0xc0] sm:$0xff]  ;;  %v308_v31 = vld [vmem:[%s1959_s11 + $0xc8] sm:$0xff]  ;;  %v293_v32 = vld [vmem:[%s1959_s11 + $0x50] sm:$0xff]  ;;  %v326_v36 = vpack.c.bf16 %v306_v29, %v305_v27  ;;  %1688 = vmatprep.subr.bf16.mxu0 %v1754_v58 }
  0x17   : > { %1622 = vmatprep.mubr.msk.bf16.mxu1 %vm346_vm0, %v323_v17  ;;  %v294_v33 = vld [vmem:[%s1959_s11 + $0x58] sm:$0xff]  ;;  %v295_v34 = vld [vmem:[%s1959_s11 + $0x60] sm:$0xff]  ;;  %v296_v35 = vld [vmem:[%s1959_s11 + $0x68] sm:$0xff]  ;;  %v327_v38 = vpack.c.bf16 %v308_v31, %v307_v30 }
  0x18   : > { %1623 = vmatmul.mubr.msk.bf16.vlgmr.msra.gmra.mrb[0].mxu1 %vm346_vm0, %v324_v21  ;;  %v320_v39 = vpack.c.bf16 %v294_v33, %v293_v32  ;;  %v321_v40 = vpack.c.bf16 %v296_v35, %v295_v34  ;;  %v309_v41 = vld [vmem:[%s1959_s11 + $0xd0] sm:$0xff]  ;;  %v310_v42 = vld [vmem:[%s1959_s11 + $0xd8] sm:$0xff]  ;;  %v311_v43 = vld [vmem:[%s1959_s11 + $0xe0] sm:$0xff] }
  0x19   : > { %1626 = vmatprep.mubr.msk.bf16.mxu1 %vm346_vm0, %v325_v25  ;;  %1639 = vmatpush3.bf16.msra.mxu1 %v1745_v1  ;;  %v312_v44 = vld [vmem:[%s1959_s11 + $0xe8] sm:$0xff]  ;;  %v297_v46 = vld [vmem:[%s1959_s11 + $0x70] sm:$0xff]  ;;  %v298_v47 = vld [vmem:[%s1959_s11 + $0x78] sm:$0xff]  ;;  %v328_v48 = vpack.c.bf16 %v310_v42, %v309_v41 }
  0x1a   : > { %1640 = vmatprep.subr.bf16.mxu1 %v1746_v23  ;;  %v329_v49 = vpack.c.bf16 %v312_v44, %v311_v43  ;;  %v322_v51 = vpack.c.bf16 %v298_v47, %v297_v46  ;;  %v313_v52 = vld [vmem:[%s1959_s11 + $0xf0] sm:$0xff]  ;;  %v314_v53 = vld [vmem:[%s1959_s11 + $0xf8] sm:$0xff]  ;;  %1689 = vmatpush3.bf16.msra.mxu0 %v1754_v58 }
  0x1b   : > { %v330_v54 = vpack.c.bf16 %v314_v53, %v313_v52  ;;  %1690 = vmatprep.subr.bf16.mxu0 %v1755_v59 }
  0x1c   : > { %1611 = vmatmul.mubr.msk.bf16.gmra.mrb[4].mxu0 %vm346_vm0, %v318_v24 }
  0x1d   : > { %1614 = vmatprep.mubr.msk.bf16.mxu0 %vm346_vm0, %v319_v26  ;;  %1641 = vmatpush3.bf16.msra.mxu1 %v1746_v23 }
  0x1e   : > { %1642 = vmatprep.subr.bf16.mxu1 %v1747_v28  ;;  %1691 = vmatpush3.bf16.msra.mxu0 %v1755_v59 }
  0x1f   : > { %1692 = vmatprep.subr.bf16.mxu0 %v1756_v60 }
  0x20   : > { %1627 = vmatmul.mubr.msk.bf16.gmra.mrb[4].mxu1 %vm346_vm0, %v326_v36 }
  0x21   : > { %1630 = vmatprep.mubr.msk.bf16.mxu1 %vm346_vm0, %v327_v38  ;;  %1643 = vmatpush3.bf16.msra.mxu1 %v1747_v28 }
  0x22   : > { %1644 = vmatprep.subr.bf16.mxu1 %v1748_v37  ;;  %1693 = vmatpush3.bf16.msra.mxu0 %v1756_v60 }
  0x23   : > { %1694 = vmatprep.subr.bf16.mxu0 %v1757_v61 }
  0x24   : > { %1615 = vmatmul.mubr.msk.bf16.gmra.mrb[8].mxu0 %vm346_vm0, %v320_v39 }
  0x25   : > { %1618 = vmatprep.mubr.msk.bf16.mxu0 %vm346_vm0, %v321_v40  ;;  %1645 = vmatpush3.bf16.msra.mxu1 %v1748_v37 }
  0x26   : > { %1646 = vmatprep.subr.bf16.mxu1 %v1749_v45  ;;  %1695 = vmatpush3.bf16.msra.mxu0 %v1757_v61 }
  0x27   : > { %1696 = vmatprep.subr.bf16.mxu0 %v1758_v62 }
  0x28   : > { %1631 = vmatmul.mubr.msk.bf16.gmra.mrb[8].mxu1 %vm346_vm0, %v328_v48 }
  0x29   : > { %1634 = vmatprep.mubr.msk.bf16.mxu1 %vm346_vm0, %v329_v49  ;;  %1647 = vmatpush3.bf16.msra.mxu1 %v1749_v45 }
  0x2a   : > { %1648 = vmatprep.subr.bf16.mxu1 %v1750_v50  ;;  %1697 = vmatpush3.bf16.msra.mxu0 %v1758_v62 }
  0x2c   : > { %1619 = vmatmul.mubr.msk.bf16.gmra.mrb[12].mxu0 %vm346_vm0, %v322_v51 }
  0x2d   : > { %1649 = vmatpush3.bf16.msra.mxu1 %v1750_v50 }
  0x2e   : > { %1650 = vmatprep.subr.bf16.mxu1 %v1751_v55 }
  0x30   : > { %1635 = vmatmul.mubr.msk.bf16.gmra.mrb[12].mxu1 %vm346_vm0, %v330_v54 }
  0x31   : > { %1651 = vmatpush3.bf16.msra.mxu1 %v1751_v55 }
  0x32   : > { %1652 = vmatprep.subr.bf16.mxu1 %v1752_v56 }
  0x35   : > { %1653 = vmatpush3.bf16.msra.mxu1 %v1752_v56 }
  0xe7   : > { %v1608_v0 = vpop.f32.mrb[0].mxu0 }
  0xe8   : > { %v438_v1 = vadd.f32 %v1608_v0, %v2051_v63  ;;  %v429_v2 = vpop.f32.mrb[1].mxu0 }
  0xe9   : > { %v430_v3 = vadd.f32 %v2051_v63, %v429_v2  ;;  %v1609_v4 = vpop.f32.mrb[2].mxu0 }
  0xea   : > { %v441_v5 = vadd.f32 %v1609_v4, %v2051_v63  ;;  %v432_v6 = vpop.f32.mrb[3].mxu0  ;;  %v558_v8 = vmax.f32 %v438_v1, 0.0 }
  0xeb   : > { %v433_v7 = vadd.f32 %v2051_v63, %v432_v6  ;;  %v1624_v10 = vpop.f32.mrb[0].mxu1  ;;  %v556_v11 = vmax.f32 %v430_v3, 0.0 }
  0xec   : > { %v559_v9 = vmax.f32 %v441_v5, 0.0  ;;  %v502_v13 = vadd.f32 %v1624_v10, %v2051_v63  ;;  %v493_v14 = vpop.f32.mrb[1].mxu1 }
  0xed   : > { %v557_v12 = vmax.f32 %v433_v7, 0.0  ;;  %v494_v16 = vadd.f32 %v2051_v63, %v493_v14  ;;  %v1625_v17 = vpop.f32.mrb[2].mxu1 }
  0xee   : > { %v589_v15 = vpack.c.bf16 %v559_v9, %v558_v8  ;;  %v574_v20 = vmax.f32 %v502_v13, 0.0  ;;  %v505_v21 = vadd.f32 %v1625_v17, %v2051_v63  ;;  %v496_v22 = vpop.f32.mrb[3].mxu1 }
  0xef   : > { %v588_v18 = vpack.c.bf16 %v557_v12, %v556_v11  ;;  %v1612_v19 = vpop.f32.mrb[4].mxu0  ;;  %v572_v25 = vmax.f32 %v494_v16, 0.0  ;;  %v497_v26 = vadd.f32 %v2051_v63, %v496_v22 }
  0xf0   : > { %v454_v23 = vadd.f32 %v1612_v19, %v2051_v63  ;;  %v445_v24 = vpop.f32.mrb[5].mxu0  ;;  %v575_v29 = vmax.f32 %v505_v21, 0.0 }
  0xf1   : > { %v446_v27 = vadd.f32 %v2051_v63, %v445_v24  ;;  %v1613_v28 = vpop.f32.mrb[6].mxu0  ;;  %1654 = vmatprep.mubr.bf16.mxu1 %v588_v18  ;;  %v573_v33 = vmax.f32 %v497_v26, 0.0 }
  0xf2   : > { %v562_v30 = vmax.f32 %v454_v23, 0.0  ;;  %v457_v31 = vadd.f32 %v1613_v28, %v2051_v63  ;;  %v448_v32 = vpop.f32.mrb[7].mxu0  ;;  %1655 = vmatmul.mubr.bf16.vlgmr.msra.gmra.mrb[16].mxu1 %v589_v15  ;;  %v2065_v35 = vpack.c.bf16 %v575_v29, %v574_v20 }
  0xf3   : > { %v449_v34 = vadd.f32 %v2051_v63, %v448_v32  ;;  %v2067_v37 = vpack.c.bf16 %v573_v33, %v572_v25  ;;  %v1628_v38 = vpop.f32.mrb[4].mxu1  ;;  %v560_v39 = vmax.f32 %v446_v27, 0.0 }
  0xf4   : > { %v563_v36 = vmax.f32 %v457_v31, 0.0  ;;  %v518_v41 = vadd.f32 %v1628_v38, %v2051_v63  ;;  %v509_v42 = vpop.f32.mrb[5].mxu1 }
  0xf5   : > { %v561_v40 = vmax.f32 %v449_v34, 0.0  ;;  %v510_v44 = vadd.f32 %v2051_v63, %v509_v42  ;;  %v1629_v45 = vpop.f32.mrb[6].mxu1 }
  0xf6   : > { %v591_v43 = vpack.c.bf16 %v563_v36, %v562_v30  ;;  %v578_v48 = vmax.f32 %v518_v41, 0.0  ;;  %v521_v49 = vadd.f32 %v1629_v45, %v2051_v63  ;;  %v512_v50 = vpop.f32.mrb[7].mxu1 }
  0xf7   : > { %v590_v46 = vpack.c.bf16 %v561_v40, %v560_v39  ;;  %v1616_v47 = vpop.f32.mrb[8].mxu0  ;;  %v576_v53 = vmax.f32 %v510_v44, 0.0  ;;  %v513_v54 = vadd.f32 %v2051_v63, %v512_v50 }
  0xf8   : > { %v470_v51 = vadd.f32 %v1616_v47, %v2051_v63  ;;  %v461_v52 = vpop.f32.mrb[9].mxu0  ;;  %v579_v57 = vmax.f32 %v521_v49, 0.0 }
  0xf9   : > { %v462_v55 = vadd.f32 %v2051_v63, %v461_v52  ;;  %v1617_v56 = vpop.f32.mrb[10].mxu0  ;;  %1658 = vmatprep.mubr.bf16.mxu1 %v590_v46  ;;  %v577_v61 = vmax.f32 %v513_v54, 0.0 }
  0xfa   : > { %v566_v58 = vmax.f32 %v470_v51, 0.0  ;;  %v473_v59 = vadd.f32 %v1617_v56, %v2051_v63  ;;  %v464_v60 = vpop.f32.mrb[11].mxu0  ;;  %1659 = vmatmul.mubr.bf16.gmra.mrb[20].mxu1 %v591_v43  ;;  %v599_v0 = vpack.c.bf16 %v579_v57, %v578_v48 }
  0xfb   : > { %v465_v62 = vadd.f32 %v2051_v63, %v464_v60  ;;  %v598_v2 = vpack.c.bf16 %v577_v61, %v576_v53  ;;  %v1632_v3 = vpop.f32.mrb[8].mxu1  ;;  %v564_v4 = vmax.f32 %v462_v55, 0.0 }
  0xfc   : > { %v567_v1 = vmax.f32 %v473_v59, 0.0  ;;  %v534_v6 = vadd.f32 %v1632_v3, %v2051_v63  ;;  %v525_v7 = vpop.f32.mrb[9].mxu1 }
  0xfd   : > { %v565_v5 = vmax.f32 %v465_v62, 0.0  ;;  %v526_v9 = vadd.f32 %v2051_v63, %v525_v7  ;;  %v1633_v10 = vpop.f32.mrb[10].mxu1 }
  0xfe   : > { %v593_v8 = vpack.c.bf16 %v567_v1, %v566_v58  ;;  %v582_v13 = vmax.f32 %v534_v6, 0.0  ;;  %v537_v14 = vadd.f32 %v1633_v10, %v2051_v63  ;;  %v528_v15 = vpop.f32.mrb[11].mxu1 }
  0xff   : > { %v592_v11 = vpack.c.bf16 %v565_v5, %v564_v4  ;;  %v1620_v12 = vpop.f32.mrb[12].mxu0  ;;  %v580_v18 = vmax.f32 %v526_v9, 0.0  ;;  %v529_v19 = vadd.f32 %v2051_v63, %v528_v15 }
 0x100   : > { %v486_v16 = vadd.f32 %v1620_v12, %v2051_v63  ;;  %v477_v17 = vpop.f32.mrb[13].mxu0  ;;  %v583_v22 = vmax.f32 %v537_v14, 0.0 }
 0x101   : > { %v478_v20 = vadd.f32 %v2051_v63, %v477_v17  ;;  %v1621_v21 = vpop.f32.mrb[14].mxu0  ;;  %1662 = vmatprep.mubr.bf16.mxu1 %v592_v11  ;;  %v581_v26 = vmax.f32 %v529_v19, 0.0 }
 0x102   : > { %v570_v23 = vmax.f32 %v486_v16, 0.0  ;;  %v489_v24 = vadd.f32 %v1621_v21, %v2051_v63  ;;  %v480_v25 = vpop.f32.mrb[15].mxu0  ;;  %1663 = vmatmul.mubr.bf16.gmra.mrb[24].mxu1 %v593_v8  ;;  %v601_v28 = vpack.c.bf16 %v583_v22, %v582_v13 }
 0x103   : > { %v481_v27 = vadd.f32 %v2051_v63, %v480_v25  ;;  %v600_v30 = vpack.c.bf16 %v581_v26, %v580_v18  ;;  %v1636_v31 = vpop.f32.mrb[12].mxu1  ;;  %v568_v32 = vmax.f32 %v478_v20, 0.0 }
 0x104   : > { %v571_v29 = vmax.f32 %v489_v24, 0.0  ;;  %v550_v34 = vadd.f32 %v1636_v31, %v2051_v63  ;;  %v541_v36 = vpop.f32.mrb[13].mxu1 }
 0x105   : > { %v569_v33 = vmax.f32 %v481_v27, 0.0  ;;  %v542_v39 = vadd.f32 %v2051_v63, %v541_v36  ;;  %v1637_v40 = vpop.f32.mrb[14].mxu1 }
 0x106   : > { %v595_v38 = vpack.c.bf16 %v571_v29, %v570_v23  ;;  %v586_v42 = vmax.f32 %v550_v34, 0.0  ;;  %v553_v43 = vadd.f32 %v1637_v40, %v2051_v63  ;;  %v544_v44 = vpop.f32.mrb[15].mxu1 }
 0x107   : > { %v594_v41 = vpack.c.bf16 %v569_v33, %v568_v32  ;;  %v584_v45 = vmax.f32 %v542_v39, 0.0  ;;  %v545_v46 = vadd.f32 %v2051_v63, %v544_v44  ;;  %v1759_v63 = vld [vmem:[%s2474_s5 + $0x30] sm:$0xff]  }
 0x108   : > { %v587_v47 = vmax.f32 %v553_v43, 0.0  ;;  %1698 = vmatprep.subr.bf16.mxu0 %v1759_v63 }
 0x109   : > { %1666 = vmatprep.mubr.bf16.mxu1 %v594_v41  ;;  %v585_v48 = vmax.f32 %v545_v46, 0.0  ;;  %1699 = vmatpush3.bf16.msra.mxu0 %v1759_v63 }
 0x10a   : > { %1667 = vmatmul.mubr.bf16.gmra.mrb[28].mxu1 %v595_v38  ;;  %v603_v49 = vpack.c.bf16 %v587_v47, %v586_v42 }
 0x10b   : > { %1670 = vmatprep.mubr.bf16.mxu1 %v2067_v37  ;;  %v602_v50 = vpack.c.bf16 %v585_v48, %v584_v45  ;;  %v1760_v37 = vld [vmem:[%s2474_s5 + $0x38] sm:$0xff]  }
 0x10c   : > { %1700 = vmatprep.subr.bf16.mxu0 %v1760_v37 }
 0x10d   : > { %1701 = vmatpush3.bf16.msra.mxu0 %v1760_v37 }
 0x112   : > { %1671 = vmatmul.mubr.bf16.gmra.mrb[32].mxu1 %v2065_v35  ;;  %v2100_v35 = vld [vmem:[%s2473_s4] ss:$0 sm:$0xff] }
 0x113   : > { %1674 = vmatprep.mubr.bf16.mxu1 %v598_v2 }
 0x11a   : > { %1675 = vmatmul.mubr.bf16.gmra.mrb[36].mxu1 %v599_v0 }
 0x11b   : > { %1678 = vmatprep.mubr.bf16.mxu1 %v600_v30 }
 0x122   : > { %1679 = vmatmul.mubr.bf16.gmra.mrb[40].mxu1 %v601_v28 }
 0x123   : > { %1682 = vmatprep.mubr.bf16.mxu1 %v602_v50 }
 0x12a   : > { %1683 = vmatmul.mubr.bf16.gmra.mrb[44].mxu1 %v603_v49 }
 0x1c5   : > { %v1656_v51 = vpop.f32.mrb[16].mxu1 }
 0x1c6   : > { %v718_v52 = vadd.f32 %v1656_v51, %v2100_v35  ;;  %v709_v53 = vpop.f32.mrb[17].mxu1 }
 0x1c7   : > { %v710_v54 = vadd.f32 %v2100_v35, %v709_v53  ;;  %v1657_v55 = vpop.f32.mrb[18].mxu1 }
 0x1c8   : > { %v721_v56 = vadd.f32 %v1657_v55, %v2100_v35  ;;  %v712_v57 = vpop.f32.mrb[19].mxu1  ;;  %v838_v59 = vmax.f32 %v718_v52, 0.0 }
 0x1c9   : > { %v713_v58 = vadd.f32 %v2100_v35, %v712_v57  ;;  %v836_v61 = vmax.f32 %v710_v54, 0.0 }
 0x1ca   : > { %v839_v60 = vmax.f32 %v721_v56, 0.0 }
 0x1cb   : > { %v837_v62 = vmax.f32 %v713_v58, 0.0 }
 0x1cc   : > { %v869_v0 = vpack.c.bf16 %v839_v60, %v838_v59 }
 0x1cd   : > { %v868_v1 = vpack.c.bf16 %v837_v62, %v836_v61  ;;  %v1660_v2 = vpop.f32.mrb[20].mxu1 }
 0x1ce   : > { %v734_v3 = vadd.f32 %v1660_v2, %v2100_v35  ;;  %v725_v4 = vpop.f32.mrb[21].mxu1 }
 0x1cf   : > { %v726_v5 = vadd.f32 %v2100_v35, %v725_v4  ;;  %v1661_v6 = vpop.f32.mrb[22].mxu1  ;;  %1702 = vmatprep.mubr.bf16.mxu0 %v868_v1 }
 0x1d0   : > { %v737_v7 = vadd.f32 %v1661_v6, %v2100_v35  ;;  %v728_v8 = vpop.f32.mrb[23].mxu1  ;;  %1703 = vmatmul.mubr.bf16.vlgmr.msra.gmra.mrb[16].mxu0 %v869_v0  ;;  %v842_v10 = vmax.f32 %v734_v3, 0.0 }
 0x1d1   : > { %v729_v9 = vadd.f32 %v2100_v35, %v728_v8  ;;  %v840_v12 = vmax.f32 %v726_v5, 0.0 }
 0x1d2   : > { %v843_v11 = vmax.f32 %v737_v7, 0.0 }
 0x1d3   : > { %v841_v13 = vmax.f32 %v729_v9, 0.0 }
 0x1d4   : > { %v871_v14 = vpack.c.bf16 %v843_v11, %v842_v10 }
 0x1d5   : > { %v870_v15 = vpack.c.bf16 %v841_v13, %v840_v12  ;;  %v1664_v16 = vpop.f32.mrb[24].mxu1 }
 0x1d6   : > { %v750_v17 = vadd.f32 %v1664_v16, %v2100_v35  ;;  %v741_v18 = vpop.f32.mrb[25].mxu1 }
 0x1d7   : > { %v742_v19 = vadd.f32 %v2100_v35, %v741_v18  ;;  %v1665_v20 = vpop.f32.mrb[26].mxu1  ;;  %1706 = vmatprep.mubr.bf16.mxu0 %v870_v15 }
 0x1d8   : > { %v753_v21 = vadd.f32 %v1665_v20, %v2100_v35  ;;  %v744_v22 = vpop.f32.mrb[27].mxu1  ;;  %1707 = vmatmul.mubr.bf16.gmra.mrb[20].mxu0 %v871_v14  ;;  %v846_v24 = vmax.f32 %v750_v17, 0.0 }
 0x1d9   : > { %v745_v23 = vadd.f32 %v2100_v35, %v744_v22  ;;  %v844_v26 = vmax.f32 %v742_v19, 0.0 }
 0x1da   : > { %v847_v25 = vmax.f32 %v753_v21, 0.0 }
 0x1db   : > { %v845_v27 = vmax.f32 %v745_v23, 0.0 }
 0x1dc   : > { %v873_v28 = vpack.c.bf16 %v847_v25, %v846_v24 }
 0x1dd   : > { %v872_v29 = vpack.c.bf16 %v845_v27, %v844_v26  ;;  %v1668_v30 = vpop.f32.mrb[28].mxu1 }
 0x1de   : > { %v766_v31 = vadd.f32 %v1668_v30, %v2100_v35  ;;  %v757_v32 = vpop.f32.mrb[29].mxu1 }
 0x1df   : > { %v758_v33 = vadd.f32 %v2100_v35, %v757_v32  ;;  %v1669_v34 = vpop.f32.mrb[30].mxu1  ;;  %1710 = vmatprep.mubr.bf16.mxu0 %v872_v29 }
 0x1e0   : > { %v769_v36 = vadd.f32 %v1669_v34, %v2100_v35  ;;  %v760_v38 = vpop.f32.mrb[31].mxu1  ;;  %1711 = vmatmul.mubr.bf16.gmra.mrb[24].mxu0 %v873_v28  ;;  %v850_v40 = vmax.f32 %v766_v31, 0.0 }
 0x1e1   : > { %v761_v39 = vadd.f32 %v2100_v35, %v760_v38  ;;  %v848_v42 = vmax.f32 %v758_v33, 0.0 }
 0x1e2   : > { %v851_v41 = vmax.f32 %v769_v36, 0.0 }
 0x1e3   : > { %v849_v43 = vmax.f32 %v761_v39, 0.0  ;;  %v2137_v39 = vld [vmem:[%s2475_s6] ss:$0 sm:$0xff] }
 0x1e4   : > { %v875_v44 = vpack.c.bf16 %v851_v41, %v850_v40 }
 0x1e5   : > { %v874_v45 = vpack.c.bf16 %v849_v43, %v848_v42  ;;  %v1672_v46 = vpop.f32.mrb[32].mxu1 }
 0x1e6   : > { %v782_v47 = vadd.f32 %v1672_v46, %v2100_v35  ;;  %v773_v48 = vpop.f32.mrb[33].mxu1 }
 0x1e7   : > { %v774_v49 = vadd.f32 %v2100_v35, %v773_v48  ;;  %v1673_v50 = vpop.f32.mrb[34].mxu1  ;;  %1714 = vmatprep.mubr.bf16.mxu0 %v874_v45 }
 0x1e8   : > { %v785_v63 = vadd.f32 %v1673_v50, %v2100_v35  ;;  %v776_v37 = vpop.f32.mrb[35].mxu1  ;;  %1715 = vmatmul.mubr.bf16.gmra.mrb[28].mxu0 %v875_v44  ;;  %v854_v52 = vmax.f32 %v782_v47, 0.0 }
 0x1e9   : > { %v777_v51 = vadd.f32 %v2100_v35, %v776_v37  ;;  %v852_v54 = vmax.f32 %v774_v49, 0.0 }
 0x1ea   : > { %v855_v53 = vmax.f32 %v785_v63, 0.0 }
 0x1eb   : > { %v853_v55 = vmax.f32 %v777_v51, 0.0 }
 0x1ec   : > { %v877_v56 = vpack.c.bf16 %v855_v53, %v854_v52 }
 0x1ed   : > { %v876_v57 = vpack.c.bf16 %v853_v55, %v852_v54  ;;  %v1676_v58 = vpop.f32.mrb[36].mxu1 }
 0x1ee   : > { %v798_v59 = vadd.f32 %v1676_v58, %v2100_v35  ;;  %v789_v60 = vpop.f32.mrb[37].mxu1 }
 0x1ef   : > { %v790_v61 = vadd.f32 %v2100_v35, %v789_v60  ;;  %v1677_v62 = vpop.f32.mrb[38].mxu1  ;;  %1718 = vmatprep.mubr.bf16.mxu0 %v876_v57 }
 0x1f0   : > { %v801_v0 = vadd.f32 %v1677_v62, %v2100_v35  ;;  %v792_v1 = vpop.f32.mrb[39].mxu1  ;;  %1719 = vmatmul.mubr.bf16.gmra.mrb[32].mxu0 %v877_v56  ;;  %v858_v3 = vmax.f32 %v798_v59, 0.0 }
 0x1f1   : > { %v793_v2 = vadd.f32 %v2100_v35, %v792_v1  ;;  %v856_v5 = vmax.f32 %v790_v61, 0.0 }
 0x1f2   : > { %v859_v4 = vmax.f32 %v801_v0, 0.0 }
 0x1f3   : > { %v857_v6 = vmax.f32 %v793_v2, 0.0 }
 0x1f4   : > { %v879_v7 = vpack.c.bf16 %v859_v4, %v858_v3 }
 0x1f5   : > { %v878_v8 = vpack.c.bf16 %v857_v6, %v856_v5  ;;  %v1680_v9 = vpop.f32.mrb[40].mxu1 }
 0x1f6   : > { %v814_v10 = vadd.f32 %v1680_v9, %v2100_v35  ;;  %v805_v11 = vpop.f32.mrb[41].mxu1 }
 0x1f7   : > { %v806_v12 = vadd.f32 %v2100_v35, %v805_v11  ;;  %v1681_v13 = vpop.f32.mrb[42].mxu1  ;;  %1722 = vmatprep.mubr.bf16.mxu0 %v878_v8 }
 0x1f8   : > { %v817_v14 = vadd.f32 %v1681_v13, %v2100_v35  ;;  %v808_v15 = vpop.f32.mrb[43].mxu1  ;;  %1723 = vmatmul.mubr.bf16.gmra.mrb[36].mxu0 %v879_v7  ;;  %v862_v17 = vmax.f32 %v814_v10, 0.0 }
 0x1f9   : > { %v809_v16 = vadd.f32 %v2100_v35, %v808_v15  ;;  %v860_v19 = vmax.f32 %v806_v12, 0.0 }
 0x1fa   : > { %v863_v18 = vmax.f32 %v817_v14, 0.0 }
 0x1fb   : > { %v861_v20 = vmax.f32 %v809_v16, 0.0 }
 0x1fc   : > { %v881_v21 = vpack.c.bf16 %v863_v18, %v862_v17 }
 0x1fd   : > { %v880_v22 = vpack.c.bf16 %v861_v20, %v860_v19  ;;  %v1684_v23 = vpop.f32.mrb[44].mxu1 }
 0x1fe   : > { %v830_v24 = vadd.f32 %v1684_v23, %v2100_v35  ;;  %v821_v25 = vpop.f32.mrb[45].mxu1 }
 0x1ff   : > { %v822_v26 = vadd.f32 %v2100_v35, %v821_v25  ;;  %v1685_v27 = vpop.f32.mrb[46].mxu1  ;;  %1726 = vmatprep.mubr.bf16.mxu0 %v880_v22 }
 0x200   : > { %v833_v28 = vadd.f32 %v1685_v27, %v2100_v35  ;;  %v824_v29 = vpop.f32.mrb[47].mxu1  ;;  %1727 = vmatmul.mubr.bf16.gmra.mrb[40].mxu0 %v881_v21  ;;  %v866_v31 = vmax.f32 %v830_v24, 0.0 }
 0x201   : > { %v825_v30 = vadd.f32 %v2100_v35, %v824_v29  ;;  %v864_v33 = vmax.f32 %v822_v26, 0.0 }
 0x202   : > { %v867_v32 = vmax.f32 %v833_v28, 0.0 }
 0x203   : > { %v865_v34 = vmax.f32 %v825_v30, 0.0 }
 0x204   : > { %v883_v36 = vpack.c.bf16 %v867_v32, %v866_v31 }
 0x205   : > { %v882_v38 = vpack.c.bf16 %v865_v34, %v864_v33 }
 0x207   : > { %1730 = vmatprep.mubr.bf16.mxu0 %v882_v38 }
 0x208   : > { %1731 = vmatmul.mubr.bf16.gmra.mrb[44].mxu0 %v883_v36 }
 0x2a3   : > { %v1704_v40 = vpop.f32.mrb[16].mxu0 }
 0x2a4   : > { %v2140_v41 = vadd.f32 %v1704_v40, %v2137_v39  ;;  %v989_v42 = vpop.f32.mrb[17].mxu0 }
 0x2a5   : > { %v2143_v35 = vadd.f32 %v2137_v39, %v989_v42  ;;  %v1705_v43 = vpop.f32.mrb[18].mxu0 }
 0x2a6   : > { %1120 = vmax.xlane.f32.xlu1 %v2140_v41  ;;  %v992_v44 = vpop.f32.mrb[19].mxu0  ;;  %v2148_v45 = vadd.f32 %v1705_v43, %v2137_v39 }
 0x2a7   : > { %1116 = vmax.xlane.f32.xlu0 %v2143_v35  ;;  %v2151_v46 = vadd.f32 %v2137_v39, %v992_v44 }
 0x2aa   : > { %1122 = vmax.xlane.f32.xlu1 %v2148_v45 }
 0x2ab   : > { %v1708_v47 = vpop.f32.mrb[20].mxu0  ;;  %1118 = vmax.xlane.f32.xlu0 %v2151_v46 }
 0x2ac   : > { %v2156_v48 = vadd.f32 %v1708_v47, %v2137_v39  ;;  %v1005_v49 = vpop.f32.mrb[21].mxu0 }
 0x2ad   : > { %v1709_v50 = vpop.f32.mrb[22].mxu0  ;;  %v2164_v51 = vadd.f32 %v2137_v39, %v1005_v49 }
 0x2ae   : > { %v2159_v63 = vadd.f32 %v1709_v50, %v2137_v39  ;;  %v1008_v37 = vpop.f32.mrb[23].mxu0 }
 0x2af   : > { %1128 = vmax.xlane.f32.xlu0 %v2156_v48  ;;  %v2167_v52 = vadd.f32 %v2137_v39, %v1008_v37 }
 0x2b0   : > { %1130 = vmax.xlane.f32.xlu1 %v2159_v63 }
 0x2b3   : > { %v1712_v53 = vpop.f32.mrb[24].mxu0  ;;  %1124 = vmax.xlane.f32.xlu0 %v2164_v51 }
 0x2b4   : > { %v2171_v54 = vadd.f32 %v1712_v53, %v2137_v39  ;;  %v1021_v55 = vpop.f32.mrb[25].mxu0  ;;  %1126 = vmax.xlane.f32.xlu1 %v2167_v52 }
 0x2b5   : > { %v1713_v56 = vpop.f32.mrb[26].mxu0  ;;  %v2180_v59 = vadd.f32 %v2137_v39, %v1021_v55 }
 0x2b6   : > { %v2175_v57 = vadd.f32 %v1713_v56, %v2137_v39  ;;  %v1024_v58 = vpop.f32.mrb[27].mxu0 }
 0x2b7   : > { %1136 = vmax.xlane.f32.xlu0 %v2171_v54  ;;  %v2183_v60 = vadd.f32 %v2137_v39, %v1024_v58 }
 0x2b8   : > { %1138 = vmax.xlane.f32.xlu1 %v2175_v57 }
 0x2bb   : > { %v1716_v61 = vpop.f32.mrb[28].mxu0  ;;  %1132 = vmax.xlane.f32.xlu0 %v2180_v59 }
 0x2bc   : > { %v2187_v62 = vadd.f32 %v1716_v61, %v2137_v39  ;;  %v1037_v0 = vpop.f32.mrb[29].mxu0  ;;  %1134 = vmax.xlane.f32.xlu1 %v2183_v60 }
 0x2bd   : > { %v1717_v1 = vpop.f32.mrb[30].mxu0  ;;  %v2196_v4 = vadd.f32 %v2137_v39, %v1037_v0 }
 0x2be   : > { %v2191_v2 = vadd.f32 %v1717_v1, %v2137_v39  ;;  %v1040_v3 = vpop.f32.mrb[31].mxu0 }
 0x2bf   : > { %1144 = vmax.xlane.f32.xlu0 %v2187_v62  ;;  %v2199_v5 = vadd.f32 %v2137_v39, %v1040_v3 }
 0x2c0   : > { %1146 = vmax.xlane.f32.xlu1 %v2191_v2 }
 0x2c3   : > { %v1720_v6 = vpop.f32.mrb[32].mxu0  ;;  %1140 = vmax.xlane.f32.xlu0 %v2196_v4 }
 0x2c4   : > { %v2203_v7 = vadd.f32 %v1720_v6, %v2137_v39  ;;  %v1053_v8 = vpop.f32.mrb[33].mxu0  ;;  %1142 = vmax.xlane.f32.xlu1 %v2199_v5 }
 0x2c5   : > { %v1721_v9 = vpop.f32.mrb[34].mxu0  ;;  %v2212_v12 = vadd.f32 %v2137_v39, %v1053_v8 }
 0x2c6   : > { %v2207_v10 = vadd.f32 %v1721_v9, %v2137_v39  ;;  %v1056_v11 = vpop.f32.mrb[35].mxu0 }
 0x2c7   : > { %1152 = vmax.xlane.f32.xlu0 %v2203_v7  ;;  %v2215_v13 = vadd.f32 %v2137_v39, %v1056_v11 }
 0x2c8   : > { %1154 = vmax.xlane.f32.xlu1 %v2207_v10 }
 0x2cb   : > { %v1724_v14 = vpop.f32.mrb[36].mxu0  ;;  %1148 = vmax.xlane.f32.xlu0 %v2212_v12 }
 0x2cc   : > { %v2219_v15 = vadd.f32 %v1724_v14, %v2137_v39  ;;  %v1069_v16 = vpop.f32.mrb[37].mxu0  ;;  %1150 = vmax.xlane.f32.xlu1 %v2215_v13 }
 0x2cd   : > { %v1725_v17 = vpop.f32.mrb[38].mxu0  ;;  %v2228_v20 = vadd.f32 %v2137_v39, %v1069_v16 }
 0x2ce   : > { %v2223_v18 = vadd.f32 %v1725_v17, %v2137_v39  ;;  %v1072_v19 = vpop.f32.mrb[39].mxu0 }
 0x2cf   : > { %1160 = vmax.xlane.f32.xlu0 %v2219_v15  ;;  %v2231_v21 = vadd.f32 %v2137_v39, %v1072_v19 }
 0x2d0   : > { %1162 = vmax.xlane.f32.xlu1 %v2223_v18 }
 0x2d3   : > { %v1728_v22 = vpop.f32.mrb[40].mxu0  ;;  %1156 = vmax.xlane.f32.xlu0 %v2228_v20 }
 0x2d4   : > { %v2235_v23 = vadd.f32 %v1728_v22, %v2137_v39  ;;  %v1085_v24 = vpop.f32.mrb[41].mxu0  ;;  %1158 = vmax.xlane.f32.xlu1 %v2231_v21 }
 0x2d5   : > { %v1729_v25 = vpop.f32.mrb[42].mxu0  ;;  %v2244_v28 = vadd.f32 %v2137_v39, %v1085_v24 }
 0x2d6   : > { %v2239_v26 = vadd.f32 %v1729_v25, %v2137_v39  ;;  %v1088_v27 = vpop.f32.mrb[43].mxu0 }
 0x2d7   : > { %1168 = vmax.xlane.f32.xlu0 %v2235_v23  ;;  %v2247_v29 = vadd.f32 %v2137_v39, %v1088_v27 }
 0x2d8   : > { %1170 = vmax.xlane.f32.xlu1 %v2239_v26 }
 0x2db   : > { %v1732_v30 = vpop.f32.mrb[44].mxu0  ;;  %1164 = vmax.xlane.f32.xlu0 %v2244_v28 }
 0x2dc   : > { %v1101_v31 = vpop.f32.mrb[45].mxu0  ;;  %1166 = vmax.xlane.f32.xlu1 %v2247_v29  ;;  %v2259_v38 = vadd.f32 %v1732_v30, %v2137_v39 }
 0x2dd   : > { %v2252_v32 = vadd.f32 %v2137_v39, %v1101_v31  ;;  %v1733_v33 = vpop.f32.mrb[46].mxu0 }
 0x2de   : > { %v1104_v34 = vpop.f32.mrb[47].mxu0  ;;  %v2263_v40 = vadd.f32 %v1733_v33, %v2137_v39 }
 0x2df   : > { %v2255_v36 = vadd.f32 %v2137_v39, %v1104_v34  ;;  %1172 = vmax.xlane.f32.xlu0 %v2252_v32 }
 0x2e1   : > { %1174 = vmax.xlane.f32.xlu1 %v2255_v36 }
 0x2e3   : > { %1176 = vmax.xlane.f32.xlu0 %v2259_v38 }
 0x2e5   : > { %1178 = vmax.xlane.f32.xlu1 %v2263_v40 }
 0x333   : > { %v1121_v42 = vpop.xlane.xlu1 %1120 }
 0x334   : > { %v1182_v43 = vsub.f32 %v2140_v41, %v1121_v42  ;;  %v1117_v44 = vpop.xlane.xlu0 %1116 }
 0x335   : > { %v1180_v47 = vsub.f32 %v2143_v35, %v1117_v44 }
 0x336   : > { %v1216_v49 = vmul.f32 1.442695, %v1182_v43 }
 0x337   : > { %v1212_v50 = vmul.f32 1.442695, %v1180_v47  ;;  %v1123_v37 = vpop.xlane.xlu1 %1122 }
 0x338   : > { %1761 = vpow2.f32 %v1216_v49  ;;  %v1183_v53 = vsub.f32 %v2148_v45, %v1123_v37  ;;  %v1119_v55 = vpop.xlane.xlu0 %1118 }
 0x339   : > { %v1181_v39 = vsub.f32 %v2151_v46, %v1119_v55  ;;  %1763 = vpow2.f32 %v1212_v50 }
 0x33a   : > { %v1218_v56 = vmul.f32 1.442695, %v1183_v53 }
 0x33b   : > { %v1214_v58 = vmul.f32 1.442695, %v1181_v39 }
 0x33c   : > { %1765 = vpow2.f32 %v1218_v56  ;;  %v1129_v61 = vpop.xlane.xlu0 %1128 }
 0x33d   : > { %v1186_v0 = vsub.f32 %v2156_v48, %v1129_v61  ;;  %v1131_v41 = vpop.xlane.xlu1 %1130  ;;  %1767 = vpow2.f32 %v1214_v58 }
 0x33e   : > { %v1187_v1 = vsub.f32 %v2159_v63, %v1131_v41 }
 0x33f   : > { %v1224_v35 = vmul.f32 1.442695, %v1186_v0 }
 0x340   : > { %v1226_v3 = vmul.f32 1.442695, %v1187_v1  ;;  %v1125_v6 = vpop.xlane.xlu0 %1124 }
 0x341   : > { %1769 = vpow2.f32 %v1224_v35  ;;  %v1184_v45 = vsub.f32 %v2164_v51, %v1125_v6  ;;  %v1127_v8 = vpop.xlane.xlu1 %1126 }
 0x342   : > { %v2274_v9 = vpop.eup %1761  ;;  %v1185_v46 = vsub.f32 %v2167_v52, %v1127_v8  ;;  %1771 = vpow2.f32 %v1226_v3 }
 0x343   : > { %v1220_v11 = vmul.f32 1.442695, %v1184_v45  ;;  %1280 = vadd.xlane.f32.xlu0 %v2274_v9  ;;  %v2278_v16 = vpop.eup %1763 }
 0x344   : > { %v1222_v48 = vmul.f32 1.442695, %v1185_v46  ;;  %v1137_v14 = vpop.xlane.xlu0 %1136 }
 0x345   : > { %1773 = vpow2.f32 %v1220_v11  ;;  %v1190_v63 = vsub.f32 %v2171_v54, %v1137_v14  ;;  %v1139_v17 = vpop.xlane.xlu1 %1138 }
 0x346   : > { %v2281_v19 = vpop.eup %1765  ;;  %v1191_v51 = vsub.f32 %v2175_v57, %v1139_v17  ;;  %1775 = vpow2.f32 %v1222_v48 }
 0x347   : > { %v1232_v22 = vmul.f32 1.442695, %v1190_v63  ;;  %1282 = vadd.xlane.f32.xlu1 %v2281_v19  ;;  %1276 = vadd.xlane.f32.xlu0 %v2278_v16  ;;  %v2287_v30 = vpop.eup %1767 }
 0x348   : > { %v1234_v52 = vmul.f32 1.442695, %v1191_v51  ;;  %v1133_v24 = vpop.xlane.xlu0 %1132 }
 0x349   : > { %1777 = vpow2.f32 %v1232_v22  ;;  %v1188_v25 = vsub.f32 %v2180_v59, %v1133_v24  ;;  %v1135_v27 = vpop.xlane.xlu1 %1134 }
 0x34a   : > { %v1189_v54 = vsub.f32 %v2183_v60, %v1135_v27  ;;  %1779 = vpow2.f32 %v1234_v52 }
 0x34b   : > { %v2290_v31 = vpop.eup %1769  ;;  %v1228_v33 = vmul.f32 1.442695, %v1188_v25  ;;  %1278 = vadd.xlane.f32.xlu1 %v2287_v30 }
 0x34c   : > { %v1230_v57 = vmul.f32 1.442695, %v1189_v54  ;;  %1288 = vadd.xlane.f32.xlu0 %v2290_v31  ;;  %v1145_v34 = vpop.xlane.xlu0 %1144  ;;  %v2295_v59 = vpop.eup %1771 }
 0x34d   : > { %1781 = vpow2.f32 %v1228_v33  ;;  %v1194_v42 = vsub.f32 %v2187_v62, %v1145_v34  ;;  %v1147_v43 = vpop.xlane.xlu1 %1146 }
 0x34e   : > { %v1195_v44 = vsub.f32 %v2191_v2, %v1147_v43  ;;  %1783 = vpow2.f32 %v1230_v57 }
 0x34f   : > { %v2298_v47 = vpop.eup %1773  ;;  %v1240_v60 = vmul.f32 1.442695, %v1194_v42  ;;  %1290 = vadd.xlane.f32.xlu1 %v2295_v59 }
 0x350   : > { %v1242_v49 = vmul.f32 1.442695, %v1195_v44  ;;  %1284 = vadd.xlane.f32.xlu0 %v2298_v47  ;;  %v1141_v50 = vpop.xlane.xlu0 %1140  ;;  %v2303_v62 = vpop.eup %1775 }
 0x351   : > { %1785 = vpow2.f32 %v1240_v60  ;;  %v1192_v37 = vsub.f32 %v2196_v4, %v1141_v50  ;;  %v1143_v53 = vpop.xlane.xlu1 %1142 }
 0x352   : > { %v1193_v55 = vsub.f32 %v2199_v5, %v1143_v53  ;;  %1787 = vpow2.f32 %v1242_v49 }
 0x353   : > { %v2306_v39 = vpop.eup %1777  ;;  %v1236_v2 = vmul.f32 1.442695, %v1192_v37  ;;  %1286 = vadd.xlane.f32.xlu1 %v2303_v62 }
 0x354   : > { %v1238_v56 = vmul.f32 1.442695, %v1193_v55  ;;  %1296 = vadd.xlane.f32.xlu0 %v2306_v39  ;;  %v1153_v58 = vpop.xlane.xlu0 %1152  ;;  %v2311_v4 = vpop.eup %1779 }
 0x355   : > { %1789 = vpow2.f32 %v1236_v2  ;;  %v1198_v61 = vsub.f32 %v2203_v7, %v1153_v58  ;;  %v1155_v0 = vpop.xlane.xlu1 %1154 }
 0x356   : > { %v1199_v41 = vsub.f32 %v2207_v10, %v1155_v0  ;;  %1791 = vpow2.f32 %v1238_v56 }
 0x357   : > { %v2314_v1 = vpop.eup %1781  ;;  %v1248_v5 = vmul.f32 1.442695, %v1198_v61  ;;  %1298 = vadd.xlane.f32.xlu1 %v2311_v4 }
 0x358   : > { %v1250_v35 = vmul.f32 1.442695, %v1199_v41  ;;  %1292 = vadd.xlane.f32.xlu0 %v2314_v1  ;;  %v1149_v3 = vpop.xlane.xlu0 %1148  ;;  %v2319_v7 = vpop.eup %1783 }
 0x359   : > { %1793 = vpow2.f32 %v1248_v5  ;;  %v1196_v6 = vsub.f32 %v2212_v12, %v1149_v3  ;;  %v1151_v45 = vpop.xlane.xlu1 %1150 }
 0x35a   : > { %v1197_v8 = vsub.f32 %v2215_v13, %v1151_v45  ;;  %1795 = vpow2.f32 %v1250_v35 }
 0x35b   : > { %v2322_v46 = vpop.eup %1785  ;;  %v1244_v10 = vmul.f32 1.442695, %v1196_v6  ;;  %1294 = vadd.xlane.f32.xlu1 %v2319_v7 }
 0x35c   : > { %v1246_v11 = vmul.f32 1.442695, %v1197_v8  ;;  %1304 = vadd.xlane.f32.xlu0 %v2322_v46  ;;  %v1161_v48 = vpop.xlane.xlu0 %1160  ;;  %v2327_v12 = vpop.eup %1787 }
 0x35d   : > { %1797 = vpow2.f32 %v1244_v10  ;;  %v1202_v14 = vsub.f32 %v2219_v15, %v1161_v48  ;;  %v1163_v63 = vpop.xlane.xlu1 %1162 }
 0x35e   : > { %v1203_v17 = vsub.f32 %v2223_v18, %v1163_v63  ;;  %1799 = vpow2.f32 %v1246_v11 }
 0x35f   : > { %v2330_v51 = vpop.eup %1789  ;;  %v1256_v13 = vmul.f32 1.442695, %v1202_v14  ;;  %1306 = vadd.xlane.f32.xlu1 %v2327_v12 }
 0x360   : > { %v1258_v22 = vmul.f32 1.442695, %v1203_v17  ;;  %1300 = vadd.xlane.f32.xlu0 %v2330_v51  ;;  %v1157_v52 = vpop.xlane.xlu0 %1156  ;;  %v2335_v15 = vpop.eup %1791 }
 0x361   : > { %1801 = vpow2.f32 %v1256_v13  ;;  %v1200_v24 = vsub.f32 %v2228_v20, %v1157_v52  ;;  %v1159_v25 = vpop.xlane.xlu1 %1158 }
 0x362   : > { %v1201_v27 = vsub.f32 %v2231_v21, %v1159_v25  ;;  %1803 = vpow2.f32 %v1258_v22 }
 0x363   : > { %v2338_v54 = vpop.eup %1793  ;;  %v1252_v18 = vmul.f32 1.442695, %v1200_v24  ;;  %1302 = vadd.xlane.f32.xlu1 %v2335_v15 }
 0x364   : > { %v1254_v33 = vmul.f32 1.442695, %v1201_v27  ;;  %1312 = vadd.xlane.f32.xlu0 %v2338_v54  ;;  %v1169_v57 = vpop.xlane.xlu0 %1168  ;;  %v2343_v20 = vpop.eup %1795 }
 0x365   : > { %1805 = vpow2.f32 %v1252_v18  ;;  %v1206_v34 = vsub.f32 %v2235_v23, %v1169_v57  ;;  %v1171_v42 = vpop.xlane.xlu1 %1170 }
 0x366   : > { %v1207_v43 = vsub.f32 %v2239_v26, %v1171_v42  ;;  %1807 = vpow2.f32 %v1254_v33 }
 0x367   : > { %v2346_v44 = vpop.eup %1797  ;;  %v1264_v21 = vmul.f32 1.442695, %v1206_v34  ;;  %1314 = vadd.xlane.f32.xlu1 %v2343_v20 }
 0x368   : > { %v1266_v60 = vmul.f32 1.442695, %v1207_v43  ;;  %1308 = vadd.xlane.f32.xlu0 %v2346_v44  ;;  %v1165_v49 = vpop.xlane.xlu0 %1164  ;;  %v2351_v23 = vpop.eup %1799 }
 0x369   : > { %1809 = vpow2.f32 %v1264_v21  ;;  %v1204_v50 = vsub.f32 %v2244_v28, %v1165_v49  ;;  %v1167_v37 = vpop.xlane.xlu1 %1166 }
 0x36a   : > { %v1205_v53 = vsub.f32 %v2247_v29, %v1167_v37  ;;  %1811 = vpow2.f32 %v1266_v60 }
 0x36b   : > { %v2354_v55 = vpop.eup %1801  ;;  %v1260_v26 = vmul.f32 1.442695, %v1204_v50  ;;  %1310 = vadd.xlane.f32.xlu1 %v2351_v23 }
 0x36c   : > { %v1262_v2 = vmul.f32 1.442695, %v1205_v53  ;;  %1320 = vadd.xlane.f32.xlu0 %v2354_v55  ;;  %v1173_v56 = vpop.xlane.xlu0 %1172  ;;  %v2359_v61 = vpop.eup %1803 }
 0x36d   : > { %1813 = vpow2.f32 %v1260_v26  ;;  %v1208_v58 = vsub.f32 %v2252_v32, %v1173_v56 }
 0x36e   : > { %v1175_v28 = vpop.xlane.xlu1 %1174  ;;  %1815 = vpow2.f32 %v1262_v2 }
 0x36f   : > { %v2361_v0 = vpop.eup %1805  ;;  %v1268_v41 = vmul.f32 1.442695, %v1208_v58  ;;  %v1209_v29 = vsub.f32 %v2255_v36, %v1175_v28  ;;  %1322 = vadd.xlane.f32.xlu1 %v2359_v61 }
 0x370   : > { %1316 = vadd.xlane.f32.xlu0 %v2361_v0  ;;  %v1177_v5 = vpop.xlane.xlu0 %1176  ;;  %v2367_v6 = vpop.eup %1807 }
 0x371   : > { %1817 = vpow2.f32 %v1268_v41  ;;  %v1270_v35 = vmul.f32 1.442695, %v1209_v29  ;;  %v1210_v3 = vsub.f32 %v2259_v38, %v1177_v5 }
 0x372   : > { %v1179_v32 = vpop.xlane.xlu1 %1178 }
 0x373   : > { %v2369_v45 = vpop.eup %1809  ;;  %1819 = vpow2.f32 %v1270_v35  ;;  %v1272_v8 = vmul.f32 1.442695, %v1210_v3  ;;  %v1211_v10 = vsub.f32 %v2263_v40, %v1179_v32  ;;  %1318 = vadd.xlane.f32.xlu1 %v2367_v6 }
 0x374   : > { %1328 = vadd.xlane.f32.xlu0 %v2369_v45  ;;  %v2374_v11 = vpop.eup %1811 }
 0x375   : > { %1821 = vpow2.f32 %v1272_v8  ;;  %v1274_v36 = vmul.f32 1.442695, %v1211_v10 }
 0x377   : > { %v2376_v48 = vpop.eup %1813  ;;  %1823 = vpow2.f32 %v1274_v36  ;;  %1330 = vadd.xlane.f32.xlu1 %v2374_v11 }
 0x378   : > { %1324 = vadd.xlane.f32.xlu0 %v2376_v48  ;;  %v2380_v38 = vpop.eup %1815 }
 0x37b   : > { %v2382_v14 = vpop.eup %1817  ;;  %1326 = vadd.xlane.f32.xlu1 %v2380_v38 }
 0x37c   : > { %1332 = vadd.xlane.f32.xlu0 %v2382_v14 }
 0x37d   : > { %v2386_v40 = vpop.eup %1819 }
 0x37f   : > { %v2388_v63 = vpop.eup %1821  ;;  %1334 = vadd.xlane.f32.xlu1 %v2386_v40 }
 0x380   : > { %1336 = vadd.xlane.f32.xlu0 %v2388_v63 }
 0x381   : > { %v2392_v17 = vpop.eup %1823 }
 0x383   : > { %1338 = vadd.xlane.f32.xlu1 %v2392_v17 }
 0x3d0   : > { %v1281_v13 = vpop.xlane.xlu0 %1280 }
 0x3d1   : > { %1825 = vrcp.f32 %v1281_v13 }
 0x3d4   : > { %v1283_v22 = vpop.xlane.xlu1 %1282  ;;  %v1277_v52 = vpop.xlane.xlu0 %1276 }
 0x3d5   : > { %1827 = vrcp.f32 %v1283_v22 }
 0x3d6   : > { %1829 = vrcp.f32 %v1277_v52 }
 0x3d8   : > { %v1279_v24 = vpop.xlane.xlu1 %1278 }
 0x3d9   : > { %1831 = vrcp.f32 %v1279_v24  ;;  %v1289_v25 = vpop.xlane.xlu0 %1288 }
 0x3da   : > { %1833 = vrcp.f32 %v1289_v25 }
 0x3db   : > { %v1826_v27 = vpop.eup %1825 }
 0x3dc   : > { %v1374_v18 = vmul.f32 %v1826_v27, %v2274_v9  ;;  %v1291_v33 = vpop.xlane.xlu1 %1290 }
 0x3dd   : > { %1835 = vrcp.f32 %v1291_v33  ;;  %v1285_v57 = vpop.xlane.xlu0 %1284 }
 0x3de   : > { %1406 = vst [vmem:[%s2400_s10 + $0x10] sm:$0xff] %v1374_v18  ;;  %1837 = vrcp.f32 %v1285_v57 }
 0x3df   : > { %v1828_v34 = vpop.eup %1827 }
 0x3e0   : > { %v1830_v42 = vpop.eup %1829  ;;  %v1375_v43 = vmul.f32 %v1828_v34, %v2281_v19  ;;  %v1287_v21 = vpop.xlane.xlu1 %1286 }
 0x3e1   : > { %v1372_v60 = vmul.f32 %v1830_v42, %v2278_v16  ;;  %1839 = vrcp.f32 %v1287_v21  ;;  %v1297_v49 = vpop.xlane.xlu0 %1296 }
 0x3e2   : > { %1407 = vst [vmem:[%s2400_s10 + $0x18] sm:$0xff] %v1375_v43  ;;  %1841 = vrcp.f32 %v1297_v49 }
 0x3e3   : > { %v1832_v9 = vpop.eup %1831  ;;  %1404 = vst [vmem:[%s2400_s10] sm:$0xff] %v1372_v60 }
 0x3e4   : > { %v1834_v50 = vpop.eup %1833  ;;  %v1373_v37 = vmul.f32 %v1832_v9, %v2287_v30  ;;  %v1299_v53 = vpop.xlane.xlu1 %1298 }
 0x3e5   : > { %v1378_v26 = vmul.f32 %v1834_v50, %v2290_v31  ;;  %1843 = vrcp.f32 %v1299_v53  ;;  %v1293_v19 = vpop.xlane.xlu0 %1292 }
 0x3e6   : > { %1405 = vst [vmem:[%s2400_s10 + $0x8] sm:$0xff] %v1373_v37  ;;  %1845 = vrcp.f32 %v1293_v19 }
 0x3e7   : > { %v1836_v16 = vpop.eup %1835  ;;  %1410 = vst [vmem:[%s2400_s10 + $0x30] sm:$0xff] %v1378_v26 }
 0x3e8   : > { %v1838_v2 = vpop.eup %1837  ;;  %v1379_v56 = vmul.f32 %v1836_v16, %v2295_v59  ;;  %v1295_v58 = vpop.xlane.xlu1 %1294 }
 0x3e9   : > { %v1376_v28 = vmul.f32 %v1838_v2, %v2298_v47  ;;  %1847 = vrcp.f32 %v1295_v58  ;;  %v1305_v30 = vpop.xlane.xlu0 %1304 }
 0x3ea   : > { %1411 = vst [vmem:[%s2400_s10 + $0x38] sm:$0xff] %v1379_v56  ;;  %1849 = vrcp.f32 %v1305_v30 }
 0x3eb   : > { %v1840_v31 = vpop.eup %1839  ;;  %1408 = vst [vmem:[%s2400_s10 + $0x20] sm:$0xff] %v1376_v28 }
 0x3ec   : > { %v1842_v41 = vpop.eup %1841  ;;  %v1377_v29 = vmul.f32 %v1840_v31, %v2303_v62  ;;  %v1307_v5 = vpop.xlane.xlu1 %1306 }
 0x3ed   : > { %v1382_v35 = vmul.f32 %v1842_v41, %v2306_v39  ;;  %1851 = vrcp.f32 %v1307_v5  ;;  %v1301_v59 = vpop.xlane.xlu0 %1300 }
 0x3ee   : > { %1409 = vst [vmem:[%s2400_s10 + $0x28] sm:$0xff] %v1377_v29  ;;  %1853 = vrcp.f32 %v1301_v59 }
 0x3ef   : > { %v1844_v47 = vpop.eup %1843  ;;  %1414 = vst [vmem:[%s2400_s10 + $0x50] sm:$0xff] %v1382_v35 }
 0x3f0   : > { %v1846_v3 = vpop.eup %1845  ;;  %v1383_v32 = vmul.f32 %v1844_v47, %v2311_v4  ;;  %v1303_v8 = vpop.xlane.xlu1 %1302 }
 0x3f1   : > { %v1380_v10 = vmul.f32 %v1846_v3, %v2314_v1  ;;  %1855 = vrcp.f32 %v1303_v8  ;;  %v1313_v62 = vpop.xlane.xlu0 %1312 }
 0x3f2   : > { %1415 = vst [vmem:[%s2400_s10 + $0x58] sm:$0xff] %v1383_v32  ;;  %1857 = vrcp.f32 %v1313_v62 }
 0x3f3   : > { %v1848_v39 = vpop.eup %1847  ;;  %1412 = vst [vmem:[%s2400_s10 + $0x40] sm:$0xff] %v1380_v10 }
 0x3f4   : > { %v1850_v36 = vpop.eup %1849  ;;  %v1381_v13 = vmul.f32 %v1848_v39, %v2319_v7  ;;  %v1315_v22 = vpop.xlane.xlu1 %1314 }
 0x3f5   : > { %v1386_v52 = vmul.f32 %v1850_v36, %v2322_v46  ;;  %1859 = vrcp.f32 %v1315_v22  ;;  %v1309_v4 = vpop.xlane.xlu0 %1308 }
 0x3f6   : > { %1413 = vst [vmem:[%s2400_s10 + $0x48] sm:$0xff] %v1381_v13  ;;  %1861 = vrcp.f32 %v1309_v4 }
 0x3f7   : > { %v1852_v1 = vpop.eup %1851  ;;  %1418 = vst [vmem:[%s2400_s10 + $0x70] sm:$0xff] %v1386_v52 }
 0x3f8   : > { %v1854_v24 = vpop.eup %1853  ;;  %v1387_v25 = vmul.f32 %v1852_v1, %v2327_v12  ;;  %v1311_v27 = vpop.xlane.xlu1 %1310 }
 0x3f9   : > { %v1384_v18 = vmul.f32 %v1854_v24, %v2330_v51  ;;  %1863 = vrcp.f32 %v1311_v27  ;;  %v1321_v7 = vpop.xlane.xlu0 %1320 }
 0x3fa   : > { %1419 = vst [vmem:[%s2400_s10 + $0x78] sm:$0xff] %v1387_v25  ;;  %1865 = vrcp.f32 %v1321_v7 }
 0x3fb   : > { %v1856_v46 = vpop.eup %1855  ;;  %1416 = vst [vmem:[%s2400_s10 + $0x60] sm:$0xff] %v1384_v18 }
 0x3fc   : > { %v1858_v33 = vpop.eup %1857  ;;  %v1385_v57 = vmul.f32 %v1856_v46, %v2335_v15  ;;  %v1323_v34 = vpop.xlane.xlu1 %1322 }
 0x3fd   : > { %v1390_v42 = vmul.f32 %v1858_v33, %v2338_v54  ;;  %1867 = vrcp.f32 %v1323_v34  ;;  %v1317_v12 = vpop.xlane.xlu0 %1316 }
 0x3fe   : > { %1417 = vst [vmem:[%s2400_s10 + $0x68] sm:$0xff] %v1385_v57  ;;  %1869 = vrcp.f32 %v1317_v12 }
 0x3ff   : > { %v1860_v51 = vpop.eup %1859  ;;  %1422 = vst [vmem:[%s2400_s10 + $0x90] sm:$0xff] %v1390_v42 }
 0x400   : > { %v1862_v43 = vpop.eup %1861  ;;  %v1391_v21 = vmul.f32 %v1860_v51, %v2343_v20  ;;  %v1319_v60 = vpop.xlane.xlu1 %1318 }
 0x401   : > { %v1388_v49 = vmul.f32 %v1862_v43, %v2346_v44  ;;  %1871 = vrcp.f32 %v1319_v60  ;;  %v1329_v15 = vpop.xlane.xlu0 %1328 }
 0x402   : > { %1423 = vst [vmem:[%s2400_s10 + $0x98] sm:$0xff] %v1391_v21  ;;  %1873 = vrcp.f32 %v1329_v15 }
 0x403   : > { %v1864_v54 = vpop.eup %1863  ;;  %1420 = vst [vmem:[%s2400_s10 + $0x80] sm:$0xff] %v1388_v49 }
 0x404   : > { %v1866_v9 = vpop.eup %1865  ;;  %v1389_v50 = vmul.f32 %v1864_v54, %v2351_v23  ;;  %v1331_v37 = vpop.xlane.xlu1 %1330 }
 0x405   : > { %v1394_v53 = vmul.f32 %v1866_v9, %v2354_v55  ;;  %1875 = vrcp.f32 %v1331_v37  ;;  %v1325_v20 = vpop.xlane.xlu0 %1324 }
 0x406   : > { %1421 = vst [vmem:[%s2400_s10 + $0x88] sm:$0xff] %v1389_v50  ;;  %1877 = vrcp.f32 %v1325_v20 }
 0x407   : > { %v1868_v44 = vpop.eup %1867  ;;  %1426 = vst [vmem:[%s2400_s10 + $0xb0] sm:$0xff] %v1394_v53 }
 0x408   : > { %v1870_v26 = vpop.eup %1869  ;;  %v1395_v19 = vmul.f32 %v1868_v44, %v2359_v61  ;;  %v1327_v16 = vpop.xlane.xlu1 %1326 }
 0x409   : > { %v1392_v2 = vmul.f32 %v1870_v26, %v2361_v0  ;;  %1879 = vrcp.f32 %v1327_v16  ;;  %v1333_v23 = vpop.xlane.xlu0 %1332 }
 0x40a   : > { %1427 = vst [vmem:[%s2400_s10 + $0xb8] sm:$0xff] %v1395_v19  ;;  %1881 = vrcp.f32 %v1333_v23 }
 0x40b   : > { %v1872_v55 = vpop.eup %1871  ;;  %1424 = vst [vmem:[%s2400_s10 + $0xa0] sm:$0xff] %v1392_v2 }
 0x40c   : > { %v1874_v56 = vpop.eup %1873  ;;  %v1393_v58 = vmul.f32 %v1872_v55, %v2367_v6  ;;  %v1335_v28 = vpop.xlane.xlu1 %1334 }
 0x40d   : > { %v1398_v30 = vmul.f32 %v1874_v56, %v2369_v45  ;;  %1883 = vrcp.f32 %v1335_v28  ;;  %v1337_v61 = vpop.xlane.xlu0 %1336 }
 0x40e   : > { %1425 = vst [vmem:[%s2400_s10 + $0xa8] sm:$0xff] %v1393_v58  ;;  %1885 = vrcp.f32 %v1337_v61 }
 0x40f   : > { %v1876_v0 = vpop.eup %1875  ;;  %1430 = vst [vmem:[%s2400_s10 + $0xd0] sm:$0xff] %v1398_v30 }
 0x410   : > { %v1878_v31 = vpop.eup %1877  ;;  %v1399_v41 = vmul.f32 %v1876_v0, %v2374_v11  ;;  %v1339_v29 = vpop.xlane.xlu1 %1338 }
 0x411   : > { %v1396_v5 = vmul.f32 %v1878_v31, %v2376_v48  ;;  %1887 = vrcp.f32 %v1339_v29 }
 0x412   : > { %1431 = vst [vmem:[%s2400_s10 + $0xd8] sm:$0xff] %v1399_v41 }
 0x413   : > { %v1880_v6 = vpop.eup %1879  ;;  %1428 = vst [vmem:[%s2400_s10 + $0xc0] sm:$0xff] %v1396_v5 }
 0x414   : > { %v1882_v45 = vpop.eup %1881  ;;  %v1397_v35 = vmul.f32 %v1880_v6, %v2380_v38 }
 0x415   : > { %v1400_v59 = vmul.f32 %v1882_v45, %v2382_v14 }
 0x416   : > { %1429 = vst [vmem:[%s2400_s10 + $0xc8] sm:$0xff] %v1397_v35 }
 0x417   : > { %v1884_v47 = vpop.eup %1883  ;;  %1432 = vst [vmem:[%s2400_s10 + $0xe0] sm:$0xff] %v1400_v59 }
 0x418   : > { %v1886_v3 = vpop.eup %1885  ;;  %v1401_v11 = vmul.f32 %v1884_v47, %v2386_v40 }
 0x419   : > { %v1402_v32 = vmul.f32 %v1886_v3, %v2388_v63 }
 0x41a   : > { %1433 = vst [vmem:[%s2400_s10 + $0xe8] sm:$0xff] %v1401_v11 }
 0x41b   : > { %v1888_v48 = vpop.eup %1887  ;;  %1434 = vst [vmem:[%s2400_s10 + $0xf0] sm:$0xff] %v1402_v32 }
 0x41c   : > { %v1403_v8 = vmul.f32 %v1888_v48, %v2392_v17 }
 0x41e   : > { %1435 = vst [vmem:[%s2400_s10 + $0xf8] sm:$0xff] %v1403_v8 }
 0x41f PF: > { %s17_s24 = sadd.s32 1, %s1895_s24  }
 0x420   : > { %p14_p4 = scmp.ge.s32.totalorder %s17_s24, 4  }
 0x422   :  { %16 = sbr.rel (!%p14_p4) target bundleno = 1 (0x1), region = 78 }

</bundles_post_ra>
